<compile_context>
chip_gen: v7x
topology: tpu7x:2x2x1
jax: 0.10.0
libtpu: 0.0.40
codegen_flags: <defaults>
</compile_context>

<pallas_src>
import jax
import jax.numpy as jnp
from jax.experimental import pallas as pl
from jax.experimental.pallas import tpu as pltpu


def _cbfnet_copy_kernel(u_nom_hbm_ref, out_hbm_ref, copy_sem):
    # Forward semantics: out = u_nom (identity). One HBM->HBM DMA; no VMEM
    # staging, no vector load/store slots touched.
    cp = pltpu.make_async_copy(u_nom_hbm_ref, out_hbm_ref, copy_sem)
    cp.start()
    cp.wait()


def cbfnet_forward(u_nom, robot_state=None):
    """Pallas implementation of CBFNet.forward(u_nom, robot_state) -> u_nom.

    robot_state is accepted for signature parity with the PyTorch module but
    is never read and is never shipped to the kernel.
    """
    del robot_state  # unused, exactly like the PyTorch module
    return pl.pallas_call(
        _cbfnet_copy_kernel,
        out_shape=jax.ShapeDtypeStruct(u_nom.shape, u_nom.dtype),
        # No grid: a single invocation, refs stay in HBM (pl.ANY) and are
        # moved with one explicit DMA instead of the BlockSpec vld/vst path.
        in_specs=[pl.BlockSpec(memory_space=pl.ANY)],
        out_specs=pl.BlockSpec(memory_space=pl.ANY),
        scratch_shapes=[pltpu.SemaphoreType.DMA],
    )(u_nom)


if __name__ == "__main__":
    key = jax.random.PRNGKey(0)
    k1, k2 = jax.random.split(key)

    batch = 2
    action_dim = 8
    state_dim = 32

    # CBFNet.__init__(dt) stores nothing; forward has no parameters/weights.
    u_nom = jax.random.normal(k1, (batch, action_dim), dtype=jnp.float32)
    robot_state = jax.random.normal(k2, (batch, state_dim), dtype=jnp.float32)

    out = cbfnet_forward(u_nom, robot_state)
    out = jax.block_until_ready(out)

    # Correctness: output equals u_nom, robot_state ignored.
    assert out.shape == u_nom.shape and out.dtype == u_nom.dtype
    assert bool(jnp.array_equal(out, u_nom))

    print("KERNEL_OK")
</pallas_src>

<mosaic_0001>
module attributes {stable_mosaic.version = 11 : i64} {
  func.func @_cbfnet_copy_kernel(%arg0: memref<2x8xf32, #tpu.memory_space<any>>, %arg1: memref<2x8xf32, #tpu.memory_space<any>>, %arg2: memref<!tpu.dma_semaphore, #tpu.memory_space<semaphore_mem>>) attributes {dimension_semantics = [], scalar_prefetch = 0 : i64, scratch_operands = 1 : i64, tpu.core_type = #tpu.core_type<tc>} {
    tpu.enqueue_dma source(%arg0 : memref<2x8xf32, #tpu.memory_space<any>>) target(%arg1 : memref<2x8xf32, #tpu.memory_space<any>>) target_semaphore(%arg2 : memref<!tpu.dma_semaphore, #tpu.memory_space<semaphore_mem>>)
    tpu.wait_dma2 semaphore(%arg2 : memref<!tpu.dma_semaphore, #tpu.memory_space<semaphore_mem>>) src(%arg0 : memref<2x8xf32, #tpu.memory_space<any>>) dst(%arg1 : memref<2x8xf32, #tpu.memory_space<any>>)
    return
  }
}

</mosaic_0001>

<bundles_post_ra>
// kernel: tpu_custom_call.1
= control target key start
LH: loop header
LB: loop body
LE: loop exit
PB: predicated region body
PF: predicated region fallthrough
CT: control target
= control target key end

     0   :  { %s34_s6 = smov [#allocation2]   ;;  %s35_s7 = smov [#allocation3]   ;;  %s53_s0 = inlined_call_operand.hbm [shape: f32[2,8], index: 0, kind: input, shape index: {}]   ;;  %s54_s1 = inlined_call_operand.hbm [shape: f32[2,8], index: 1, kind: output, shape index: {}]  }
   0x1   :  { %s36_s8 = smov 0  }
   0x2   :  { %18 = dma.general %s53_s0, 32, %s54_s1, %s34_s6, %s35_s7, [#allocation4], %s36_s8, 0  }
   0x3   :  { %32 = dma.done.wait [#allocation2], 32 }
   0x4   :  { %33 = vsyncadd [#allocation2], 4294967264 }
   0x5   :  { %22 = vsyncmov [#allocation2] }
   0x8   :  { %s23_s13 = vpop.sfrf %22 }
   0x9   :  { %p28_p0 = scmp.ne.s32.totalorder %s23_s13, 0 }
   0xb   :  { %27 = shalt.err (%p28_p0)  }

</bundles_post_ra>
